<compile_context>
chip_gen: v5e
topology: v5e:2x2
jax: 0.10.0
libtpu: 0.0.40
codegen_flags: <defaults>
</compile_context>

<pallas_src>
import jax
import jax.numpy as jnp
import numpy as np
from jax.experimental import pallas as pl
from jax.experimental.pallas import tpu as pltpu


def _round_up(n, m):
    return ((n + m - 1) // m) * m


# ---------------------------------------------------------------------------
# Kernel: one batch tile of the full 3-layer MLP forward.
#   x tile   : [TM, IN]    f32  (cast to bf16 in-kernel for the MXU)
#   w1/w2/w3 : true shapes bf16 (VMEM-resident across grid steps)
#   b1/b2/b3 : [1, N]      f32  (VMEM-resident)
#   out tile : [TM, OUT]   f32
# MXU consumes bf16, accumulates f32; bias-add / ReLU stay f32 (v5e-safe).
# ---------------------------------------------------------------------------
def mlp_kernel(x_ref, w1_ref, b1_ref, w2_ref, b2_ref, w3_ref, b3_ref, o_ref):
    x = x_ref[...].astype(jnp.bfloat16)

    h1 = jnp.dot(x, w1_ref[...], preferred_element_type=jnp.float32) + b1_ref[...]
    h1 = jnp.maximum(h1, 0.0).astype(jnp.bfloat16)          # ReLU, re-feed MXU as bf16

    h2 = jnp.dot(h1, w2_ref[...], preferred_element_type=jnp.float32) + b2_ref[...]
    h2 = jnp.maximum(h2, 0.0).astype(jnp.bfloat16)

    out = jnp.dot(h2, w3_ref[...], preferred_element_type=jnp.float32) + b3_ref[...]
    o_ref[...] = out.astype(o_ref.dtype)


# ---------------------------------------------------------------------------
# Parameter handling.
# ---------------------------------------------------------------------------
def init_params(key, in_dim, n_hidden_1, n_hidden_2, out_dim, dtype=jnp.float32):
    """PyTorch nn.Linear default init (U[-1/sqrt(fan_in), +]); w stored [fan_in, fan_out]."""
    ks = jax.random.split(key, 6)

    def linear(kw, kb, fan_in, fan_out):
        bound = 1.0 / np.sqrt(fan_in)
        w = jax.random.uniform(kw, (fan_in, fan_out), dtype, -bound, bound)
        b = jax.random.uniform(kb, (fan_out,), dtype, -bound, bound)
        return w, b

    w1, b1 = linear(ks[0], ks[1], in_dim, n_hidden_1)
    w2, b2 = linear(ks[2], ks[3], n_hidden_1, n_hidden_2)
    w3, b3 = linear(ks[4], ks[5], n_hidden_2, out_dim)
    return {"w1": w1, "b1": b1, "w2": w2, "b2": b2, "w3": w3, "b3": b3}


def pack_params(params):
    """One-time host-side pack: weights -> bf16 (MXU operands) in their true
    shapes, biases -> f32 [1, N].  No padding — intermediates never hit HBM."""
    pw = lambda w: w.astype(jnp.bfloat16)
    pb = lambda b: b.astype(jnp.float32).reshape(1, -1)
    return {
        "w1": pw(params["w1"]), "b1": pb(params["b1"]),
        "w2": pw(params["w2"]), "b2": pb(params["b2"]),
        "w3": pw(params["w3"]), "b3": pb(params["b3"]),
    }


# ---------------------------------------------------------------------------
# Forward wrapper: batch-tiled pallas_call with VMEM-resident weights.
# ---------------------------------------------------------------------------
def activation_net_forward(x, packed, *, tm=512):
    B, in_dim = x.shape
    w1, b1 = packed["w1"], packed["b1"]
    w2, b2 = packed["w2"], packed["b2"]
    w3, b3 = packed["w3"], packed["b3"]
    assert in_dim == w1.shape[0]
    out_dim = w3.shape[1]

    # Tile sizing: big tiles amortize per-step overhead; keep >= 2 grid steps
    # when the batch allows so both v7x TensorCores get work (near-free on
    # single-TC v5e/v6e).  16-row alignment keeps bf16 sublane packing clean.
    tm_eff = min(tm, _round_up(B, 16))
    if pl.cdiv(B, tm_eff) < 2 and B >= 32:
        tm_eff = _round_up(pl.cdiv(B, 2), 16)
    b_p = pl.cdiv(B, tm_eff) * tm_eff

    x_in = x if b_p == B else jnp.pad(x, ((0, b_p - B), (0, 0)))

    resident = lambda arr: pl.BlockSpec(arr.shape, lambda i: (0, 0))

    out = pl.pallas_call(
        mlp_kernel,
        out_shape=jax.ShapeDtypeStruct((b_p, out_dim), jnp.float32),
        grid_spec=pl.GridSpec(
            grid=(b_p // tm_eff,),
            in_specs=[
                # streamed x tiles; last dim == full array dim, so no 128-lane pad needed
                pl.BlockSpec((tm_eff, in_dim), lambda i: (i, 0)),
                resident(w1), resident(b1),   # layer 1
                resident(w2), resident(b2),   # layer 2
                resident(w3), resident(b3),   # layer 3
            ],
            out_specs=pl.BlockSpec((tm_eff, out_dim), lambda i: (i, 0)),
        ),
        compiler_params=pltpu.CompilerParams(
            dimension_semantics=("parallel",),   # shard batch tiles across TCs (v7x)
        ),
    )(x_in, w1, b1, w2, b2, w3, b3)

    return out if b_p == B else out[:B]


# ---------------------------------------------------------------------------
# Pure-JAX reference (same bf16-operand / f32-accumulate numerics as kernel).
# ---------------------------------------------------------------------------
def reference_forward(x, params):
    xb = x.astype(jnp.bfloat16)
    w1 = params["w1"].astype(jnp.bfloat16)
    w2 = params["w2"].astype(jnp.bfloat16)
    w3 = params["w3"].astype(jnp.bfloat16)
    b1 = params["b1"].astype(jnp.float32)
    b2 = params["b2"].astype(jnp.float32)
    b3 = params["b3"].astype(jnp.float32)

    h1 = jnp.maximum(jnp.dot(xb, w1, preferred_element_type=jnp.float32) + b1, 0.0)
    h1 = h1.astype(jnp.bfloat16)
    h2 = jnp.maximum(jnp.dot(h1, w2, preferred_element_type=jnp.float32) + b2, 0.0)
    h2 = h2.astype(jnp.bfloat16)
    return jnp.dot(h2, w3, preferred_element_type=jnp.float32) + b3


if __name__ == "__main__":
    key = jax.random.PRNGKey(0)
    k_x, k_p = jax.random.split(key)

    # Model dims match the PyTorch module spec; batch chosen so the grid has 2 tiles.
    batch, in_dim, n_hidden_1, n_hidden_2, out_dim = 256, 32, 64, 64, 16

    x = jax.random.normal(k_x, (batch, in_dim), dtype=jnp.float32)
    params = init_params(k_p, in_dim, n_hidden_1, n_hidden_2, out_dim)
    packed = pack_params(params)   # one-time pack (arrays only -> jit-friendly)

    fwd = jax.jit(lambda xx, pp: activation_net_forward(xx, pp, tm=512))
    out = jax.block_until_ready(fwd(x, packed))

    ref = reference_forward(x, params)
    np.testing.assert_allclose(np.asarray(out), np.asarray(ref),
                               rtol=2e-4, atol=2e-4)

    print("KERNEL_OK")
</pallas_src>

<mosaic_0001>
module attributes {stable_mosaic.version = 11 : i64} {
  func.func @mlp_kernel(%arg0: i32, %arg1: memref<128x32xf32, #tpu.memory_space<vmem>>, %arg2: memref<32x64xbf16, #tpu.memory_space<vmem>>, %arg3: memref<1x64xf32, #tpu.memory_space<vmem>>, %arg4: memref<64x64xbf16, #tpu.memory_space<vmem>>, %arg5: memref<1x64xf32, #tpu.memory_space<vmem>>, %arg6: memref<64x16xbf16, #tpu.memory_space<vmem>>, %arg7: memref<1x16xf32, #tpu.memory_space<vmem>>, %arg8: memref<128x16xf32, #tpu.memory_space<vmem>>) attributes {dimension_semantics = [#tpu.dimension_semantics<parallel>], iteration_bounds = array<i64: 2>, scalar_prefetch = 0 : i64, scratch_operands = 0 : i64, tpu.core_type = #tpu.core_type<tc>, window_params = [{transform_indices = @transform_0, window_bounds = array<i64: 128, 32>}, {pipeline_mode = #tpu.pipeline_mode<synchronous>, transform_indices = @transform_1, window_bounds = array<i64: 32, 64>}, {pipeline_mode = #tpu.pipeline_mode<synchronous>, transform_indices = @transform_2, window_bounds = array<i64: 1, 64>}, {pipeline_mode = #tpu.pipeline_mode<synchronous>, transform_indices = @transform_3, window_bounds = array<i64: 64, 64>}, {pipeline_mode = #tpu.pipeline_mode<synchronous>, transform_indices = @transform_4, window_bounds = array<i64: 1, 64>}, {pipeline_mode = #tpu.pipeline_mode<synchronous>, transform_indices = @transform_5, window_bounds = array<i64: 64, 16>}, {pipeline_mode = #tpu.pipeline_mode<synchronous>, transform_indices = @transform_6, window_bounds = array<i64: 1, 16>}, {transform_indices = @transform_7, window_bounds = array<i64: 128, 16>}]} {
    %c0 = arith.constant 0 : index
    %c0_0 = arith.constant 0 : index
    %0 = vector.load %arg1[%c0, %c0_0] : memref<128x32xf32, #tpu.memory_space<vmem>>, vector<128x32xf32>
    %1 = arith.truncf %0 : vector<128x32xf32> to vector<128x32xbf16>
    %c0_1 = arith.constant 0 : index
    %c0_2 = arith.constant 0 : index
    %2 = vector.load %arg2[%c0_1, %c0_2] : memref<32x64xbf16, #tpu.memory_space<vmem>>, vector<32x64xbf16>
    %cst = arith.constant dense<0.000000e+00> : vector<128x64xf32>
    %3 = tpu.matmul %1, %2, %cst {dimension_numbers = #tpu.dot_dimension_numbers<[1], [0], [0], [1], [0, 0, 1, 1], [], []>} : vector<128x32xbf16>, vector<32x64xbf16>, vector<128x64xf32> -> vector<128x64xf32>
    %c0_3 = arith.constant 0 : index
    %c0_4 = arith.constant 0 : index
    %4 = vector.load %arg3[%c0_3, %c0_4] : memref<1x64xf32, #tpu.memory_space<vmem>>, vector<1x64xf32>
    %5 = vector.broadcast %4 : vector<1x64xf32> to vector<128x64xf32>
    %6 = arith.addf %3, %5 : vector<128x64xf32>
    %cst_5 = arith.constant 0.000000e+00 : f32
    %7 = vector.broadcast %cst_5 : f32 to vector<128x64xf32>
    %8 = arith.maximumf %6, %7 : vector<128x64xf32>
    %9 = arith.truncf %8 : vector<128x64xf32> to vector<128x64xbf16>
    %c0_6 = arith.constant 0 : index
    %c0_7 = arith.constant 0 : index
    %10 = vector.load %arg4[%c0_6, %c0_7] : memref<64x64xbf16, #tpu.memory_space<vmem>>, vector<64x64xbf16>
    %cst_8 = arith.constant dense<0.000000e+00> : vector<128x64xf32>
    %11 = tpu.matmul %9, %10, %cst_8 {dimension_numbers = #tpu.dot_dimension_numbers<[1], [0], [0], [1], [0, 0, 1, 1], [], []>} : vector<128x64xbf16>, vector<64x64xbf16>, vector<128x64xf32> -> vector<128x64xf32>
    %c0_9 = arith.constant 0 : index
    %c0_10 = arith.constant 0 : index
    %12 = vector.load %arg5[%c0_9, %c0_10] : memref<1x64xf32, #tpu.memory_space<vmem>>, vector<1x64xf32>
    %13 = vector.broadcast %12 : vector<1x64xf32> to vector<128x64xf32>
    %14 = arith.addf %11, %13 : vector<128x64xf32>
    %cst_11 = arith.constant 0.000000e+00 : f32
    %15 = vector.broadcast %cst_11 : f32 to vector<128x64xf32>
    %16 = arith.maximumf %14, %15 : vector<128x64xf32>
    %17 = arith.truncf %16 : vector<128x64xf32> to vector<128x64xbf16>
    %c0_12 = arith.constant 0 : index
    %c0_13 = arith.constant 0 : index
    %18 = vector.load %arg6[%c0_12, %c0_13] : memref<64x16xbf16, #tpu.memory_space<vmem>>, vector<64x16xbf16>
    %cst_14 = arith.constant dense<0.000000e+00> : vector<128x16xf32>
    %19 = tpu.matmul %17, %18, %cst_14 {dimension_numbers = #tpu.dot_dimension_numbers<[1], [0], [0], [1], [0, 0, 1, 1], [], []>} : vector<128x64xbf16>, vector<64x16xbf16>, vector<128x16xf32> -> vector<128x16xf32>
    %c0_15 = arith.constant 0 : index
    %c0_16 = arith.constant 0 : index
    %20 = vector.load %arg7[%c0_15, %c0_16] : memref<1x16xf32, #tpu.memory_space<vmem>>, vector<1x16xf32>
    %21 = vector.broadcast %20 : vector<1x16xf32> to vector<128x16xf32>
    %22 = arith.addf %19, %21 : vector<128x16xf32>
    %c0_17 = arith.constant 0 : index
    %c0_18 = arith.constant 0 : index
    %23 = vector.load %arg8[%c0_17, %c0_18] : memref<128x16xf32, #tpu.memory_space<vmem>>, vector<128x16xf32>
    tpu.vector_store %arg8[%c0_17, %c0_18], %22 {strides = array<i32>} : memref<128x16xf32, #tpu.memory_space<vmem>>, vector<128x16xf32>,
    return
  }
  func.func @transform_0(%arg0: i32) -> (i32, i32) {
    %c0_i32 = arith.constant 0 : i32
    %c0_i32_0 = arith.constant 0 : i32
    return %arg0, %c0_i32 : i32, i32
  }
  func.func @transform_1(%arg0: i32) -> (i32, i32) {
    %c0_i32 = arith.constant 0 : i32
    %c0_i32_0 = arith.constant 0 : i32
    %c0_i32_1 = arith.constant 0 : i32
    return %c0_i32, %c0_i32_0 : i32, i32
  }
  func.func @transform_2(%arg0: i32) -> (i32, i32) {
    %c0_i32 = arith.constant 0 : i32
    %c0_i32_0 = arith.constant 0 : i32
    %c0_i32_1 = arith.constant 0 : i32
    return %c0_i32, %c0_i32_0 : i32, i32
  }
  func.func @transform_3(%arg0: i32) -> (i32, i32) {
    %c0_i32 = arith.constant 0 : i32
    %c0_i32_0 = arith.constant 0 : i32
    %c0_i32_1 = arith.constant 0 : i32
    return %c0_i32, %c0_i32_0 : i32, i32
  }
  func.func @transform_4(%arg0: i32) -> (i32, i32) {
    %c0_i32 = arith.constant 0 : i32
    %c0_i32_0 = arith.constant 0 : i32
    %c0_i32_1 = arith.constant 0 : i32
    return %c0_i32, %c0_i32_0 : i32, i32
  }
  func.func @transform_5(%arg0: i32) -> (i32, i32) {
    %c0_i32 = arith.constant 0 : i32
    %c0_i32_0 = arith.constant 0 : i32
    %c0_i32_1 = arith.constant 0 : i32
    return %c0_i32, %c0_i32_0 : i32, i32
  }
  func.func @transform_6(%arg0: i32) -> (i32, i32) {
    %c0_i32 = arith.constant 0 : i32
    %c0_i32_0 = arith.constant 0 : i32
    %c0_i32_1 = arith.constant 0 : i32
    return %c0_i32, %c0_i32_0 : i32, i32
  }
  func.func @transform_7(%arg0: i32) -> (i32, i32) {
    %c0_i32 = arith.constant 0 : i32
    %c0_i32_0 = arith.constant 0 : i32
    return %arg0, %c0_i32 : i32, i32
  }
}

</mosaic_0001>

<bundles_post_ra>
// kernel: _lambda_.1
= control target key start
LH: loop header
LB: loop body
LE: loop exit
PB: predicated region body
PF: predicated region fallthrough
CT: control target
= control target key end

     0   :  { %s895_s24 = smov 0   ;;  %s1052_s0 = inlined_call_operand.vmem [shape: f32[256,32], index: 0, kind: input, shape index: {}]   ;;  %s1053_s1 = inlined_call_operand.vmem [shape: bf16[32,64], index: 1, kind: input, shape index: {}]   ;;  %s1054_s2 = inlined_call_operand.vmem [shape: f32[1,64], index: 2, kind: input, shape index: {}]   ;;  %s1055_s3 = inlined_call_operand.vmem [shape: bf16[64,64], index: 3, kind: input, shape index: {}]   ;;  %s1056_s4 = inlined_call_operand.vmem [shape: f32[1,64], index: 4, kind: input, shape index: {}]   ;;  %s1057_s5 = inlined_call_operand.vmem [shape: bf16[64,16], index: 5, kind: input, shape index: {}]   ;;  %s1058_s6 = inlined_call_operand.vmem [shape: f32[1,16], index: 6, kind: input, shape index: {}]   ;;  %s1059_s7 = inlined_call_operand.vmem [shape: f32[256,16], index: 7, kind: output, shape index: {}]  }
   0x1 LB: > { %s741_s25 = sadd.s32 4294967295, %s853_s24   ;;  %p745_p0 = scmp.ge.s32.totalorder %s853_s24, 1  ;;  %s853_s24 = sphi %s895_s24, %s17_s24  }
   0x2   : > { %p238_p1 = scmp.lt.s32.totalorder %s853_s24, 3 }
   0x4   : > { %p239_p2 = pnand %p745_p0, %p238_p1 }
   0x5   : > { %s746_s28 = sshll.u32 (!%p239_p2), %s741_s25, 4 }
   0x6   : > { %242 = sbr.rel (%p239_p2) target bundleno = 560 (0x230), region = 48  ;;  %p271_p3 = scmp.lt.s32.totalorder (!%p239_p2), %s746_s28, 31 }
   0xb   : > { %v817_v0 = vld [vmem:[%s1053_s1 + $0x8] sm:$0xff]  ;;  %v816_v1 = vld [vmem:[%s1053_s1] sm:$0xff]  ;;  %s1061_s28 = smov (!%p271_p3, %s746_s28), 31  ;;  %vm327_vm0 = vcmask 261120   ;;  %v821_v25 = vld [vmem:[%s1055_s3 + $0x18] sm:$0xff]  ;;  %vm461_vm1 = vcmask 523264  }
   0xc   : > { %358 = vmatpush.bf16.msra.mxu0 %v817_v0  ;;  %826 = vmatpush.bf16.msra.mxu3 %v817_v0  ;;  %s747_s8 = sshll.u32 %s1061_s28, 3  ;;  %v820_v27 = vld [vmem:[%s1055_s3 + $0x10] sm:$0xff]  ;;  %v819_v28 = vld [vmem:[%s1055_s3 + $0x8] sm:$0xff]  ;;  %v818_v29 = vld [vmem:[%s1055_s3] sm:$0xff]  ;;  %vm668_vm2 = vcmask 130048  }
   0xd   : > { %s917_s11 = scalar_lea.vmem %s1052_s0, %s747_s8  ;;  %490 = vmatpush.bf16.msra.mxu1 %v821_v25  ;;  %v958_v31 = vld [vmem:[%s1054_s2] ss:$0 sm:$0xff]  ;;  %s1015_s16 = scalar_lea.vmem %s1059_s7, %s747_s8 }
   0xe   : > { %v283_v2 = vld [vmem:[%s917_s11] sm:$0xff]  ;;  %v284_v3 = vld [vmem:[%s917_s11 + $0x8] sm:$0xff]  ;;  %v285_v5 = vld [vmem:[%s917_s11 + $0x10] sm:$0xff] }
   0xf   : > { %v299_v4 = vpack.c.bf16 %v284_v3, %v283_v2  ;;  %v286_v6 = vld [vmem:[%s917_s11 + $0x18] sm:$0xff]  ;;  %v287_v8 = vld [vmem:[%s917_s11 + $0x20] sm:$0xff]  ;;  %v288_v9 = vld [vmem:[%s917_s11 + $0x28] sm:$0xff] }
  0x10   : > { %359 = vmatpush.bf16.msra.mxu0 %v816_v1  ;;  %827 = vmatpush.bf16.msra.mxu3 %v816_v1  ;;  %v300_v7 = vpack.c.bf16 %v286_v6, %v285_v5  ;;  %v301_v10 = vpack.c.bf16 %v288_v9, %v287_v8  ;;  %v289_v11 = vld [vmem:[%s917_s11 + $0x30] sm:$0xff]  ;;  %v290_v12 = vld [vmem:[%s917_s11 + $0x38] sm:$0xff]  ;;  %v291_v14 = vld [vmem:[%s917_s11 + $0x40] sm:$0xff] }
  0x11   : > { %v302_v13 = vpack.c.bf16 %v290_v12, %v289_v11  ;;  %v292_v15 = vld [vmem:[%s917_s11 + $0x48] sm:$0xff]  ;;  %v297_v17 = vld [vmem:[%s917_s11 + $0x70] sm:$0xff]  ;;  %v298_v18 = vld [vmem:[%s917_s11 + $0x78] sm:$0xff]  ;;  %491 = vmatpush.bf16.msra.mxu1 %v820_v27 }
  0x12   : > { %v303_v16 = vpack.c.bf16 %v292_v15, %v291_v14  ;;  %v306_v19 = vpack.c.bf16 %v298_v18, %v297_v17  ;;  %v293_v20 = vld [vmem:[%s917_s11 + $0x50] sm:$0xff]  ;;  %v294_v21 = vld [vmem:[%s917_s11 + $0x58] sm:$0xff]  ;;  %v295_v23 = vld [vmem:[%s917_s11 + $0x60] sm:$0xff] }
  0x13   : > { %758 = vmatmul.msk.bf16.vlgmr.msra.gmra.mxu0 %vm327_vm0, %v299_v4  ;;  %v304_v22 = vpack.c.bf16 %v294_v21, %v293_v20  ;;  %v296_v24 = vld [vmem:[%s917_s11 + $0x68] sm:$0xff]  ;;  %v825_v14 = vld [vmem:[%s1057_s5 + $0x18] sm:$0xff]  ;;  %v824_v18 = vld [vmem:[%s1057_s5 + $0x10] sm:$0xff] }
  0x14   : > { %765 = vmatmul.msk.bf16.vlgmr.msra.gmra.mxu3 %vm327_vm0, %v306_v19  ;;  %v305_v26 = vpack.c.bf16 %v296_v24, %v295_v23  ;;  %623 = vmatpush.bf16.msra.mxu2 %v825_v14  ;;  %v823_v20 = vld [vmem:[%s1057_s5 + $0x8] sm:$0xff]  ;;  %v822_v23 = vld [vmem:[%s1057_s5] sm:$0xff] }
  0x15   : > { %828 = vmatpush.bf16.msrb.mxu3 %v821_v25  ;;  %492 = vmatpush.bf16.msra.mxu1 %v819_v28 }
  0x18   : > { %624 = vmatpush.bf16.msra.mxu2 %v824_v18 }
  0x19   : > { %829 = vmatpush.bf16.msrb.mxu3 %v820_v27  ;;  %493 = vmatpush.bf16.msra.mxu1 %v818_v29 }
  0x1c   : > { %625 = vmatpush.bf16.msra.mxu2 %v823_v20 }
  0x1d   : > { %830 = vmatpush.bf16.msrb.mxu3 %v819_v28  ;;  %v845_v28 = vld [vmem:[%s1056_s4] ss:$0 sm:$0xff] }
  0x20   : > { %626 = vmatpush.bf16.msra.mxu2 %v822_v23 }
  0x21   : > { %831 = vmatpush.bf16.msrb.mxu3 %v818_v29 }
  0x23   : > { %759 = vmatmul.msk.bf16.gmra.mxu0 %vm327_vm0, %v300_v7 }
  0x25   : > { %832 = vmatpush.bf16.msra.mxu3 %v825_v14 }
  0x29   : > { %833 = vmatpush.bf16.msra.mxu3 %v824_v18 }
  0x2d   : > { %834 = vmatpush.bf16.msra.mxu3 %v823_v20  ;;  %v846_v20 = vld [vmem:[%s1058_s6] ss:$0 sm:$0xff] }
  0x31   : > { %835 = vmatpush.bf16.msra.mxu3 %v822_v23 }
  0x33   : > { %760 = vmatmul.msk.bf16.gmra.mxu0 %vm327_vm0, %v301_v10 }
  0x43   : > { %761 = vmatmul.msk.bf16.gmra.mxu0 %vm327_vm0, %v302_v13 }
  0x53   : > { %762 = vmatmul.msk.bf16.gmra.mxu0 %vm327_vm0, %v303_v16 }
  0x63   : > { %763 = vmatmul.msk.bf16.gmra.mxu0 %vm327_vm0, %v304_v22 }
  0x73   : > { %764 = vmatmul.msk.bf16.gmra.mxu0 %vm327_vm0, %v305_v26 }
  0x90   : > { %v361_v30 = vpop.f32.mrf.mxu0 }
  0x91   : > { %v362_v32 = vadd.f32 %v958_v31, %v361_v30 }
  0x93   : > { %v401_v35 = vmax.f32 %v362_v32, 0.0 }
  0x97   : > { %v396_v12 = vpop.f32.mrf.mxu3 }
  0x98   : > { %v363_v33 = vpop.f32.mrf.mxu0  ;;  %v397_v21 = vadd.f32 %v958_v31, %v396_v12 }
  0x99   : > { %v364_v34 = vadd.f32 %v958_v31, %v363_v33 }
  0x9a   : > { %v415_v24 = vmax.f32 %v397_v21, 0.0 }
  0x9b   : > { %v402_v36 = vmax.f32 %v364_v34, 0.0 }
  0x9d   : > { %v417_v37 = vpack.c.bf16 %v402_v36, %v401_v35 }
  0x9f   : > { %782 = vmatmul.msk.bf16.vlgmr.msra.gmra.mxu1 %vm461_vm1, %v417_v37  ;;  %v398_v19 = vpop.f32.mrf.mxu3 }
  0xa0   : > { %v366_v38 = vpop.f32.mrf.mxu0  ;;  %v399_v22 = vadd.f32 %v958_v31, %v398_v19 }
  0xa1   : > { %v367_v39 = vadd.f32 %v958_v31, %v366_v38 }
  0xa2   : > { %v416_v25 = vmax.f32 %v399_v22, 0.0 }
  0xa3   : > { %v403_v42 = vmax.f32 %v367_v39, 0.0 }
  0xa4   : > { %v424_v26 = vpack.c.bf16 %v416_v25, %v415_v24 }
  0xa8   : > { %v368_v40 = vpop.f32.mrf.mxu0 }
  0xa9   : > { %v369_v41 = vadd.f32 %v958_v31, %v368_v40 }
  0xab   : > { %v404_v43 = vmax.f32 %v369_v41, 0.0 }
  0xad   : > { %v418_v44 = vpack.c.bf16 %v404_v43, %v403_v42 }
  0xaf   : > { %783 = vmatmul.msk.bf16.gmra.mxu1 %vm461_vm1, %v418_v44 }
  0xb0   : > { %v371_v45 = vpop.f32.mrf.mxu0 }
  0xb1   : > { %v372_v46 = vadd.f32 %v958_v31, %v371_v45 }
  0xb3   : > { %v405_v49 = vmax.f32 %v372_v46, 0.0 }
  0xb8   : > { %v373_v47 = vpop.f32.mrf.mxu0 }
  0xb9   : > { %v374_v48 = vadd.f32 %v958_v31, %v373_v47 }
  0xbb   : > { %v406_v50 = vmax.f32 %v374_v48, 0.0 }
  0xbd   : > { %v419_v51 = vpack.c.bf16 %v406_v50, %v405_v49 }
  0xbf   : > { %784 = vmatmul.msk.bf16.gmra.mxu1 %vm461_vm1, %v419_v51 }
  0xc0   : > { %v376_v52 = vpop.f32.mrf.mxu0 }
  0xc1   : > { %v377_v53 = vadd.f32 %v958_v31, %v376_v52 }
  0xc3   : > { %v407_v56 = vmax.f32 %v377_v53, 0.0 }
  0xc8   : > { %v378_v54 = vpop.f32.mrf.mxu0 }
  0xc9   : > { %v379_v55 = vadd.f32 %v958_v31, %v378_v54 }
  0xcb   : > { %v408_v57 = vmax.f32 %v379_v55, 0.0 }
  0xcd   : > { %v420_v58 = vpack.c.bf16 %v408_v57, %v407_v56 }
  0xcf   : > { %785 = vmatmul.msk.bf16.gmra.mxu1 %vm461_vm1, %v420_v58 }
  0xd0   : > { %v381_v59 = vpop.f32.mrf.mxu0 }
  0xd1   : > { %v382_v60 = vadd.f32 %v958_v31, %v381_v59 }
  0xd3   : > { %v409_v63 = vmax.f32 %v382_v60, 0.0 }
  0xd8   : > { %v383_v61 = vpop.f32.mrf.mxu0 }
  0xd9   : > { %v384_v62 = vadd.f32 %v958_v31, %v383_v61 }
  0xdb   : > { %v410_v0 = vmax.f32 %v384_v62, 0.0 }
  0xdd   : > { %v421_v1 = vpack.c.bf16 %v410_v0, %v409_v63 }
  0xdf   : > { %786 = vmatmul.msk.bf16.gmra.mxu1 %vm461_vm1, %v421_v1 }
  0xe0   : > { %v386_v2 = vpop.f32.mrf.mxu0 }
  0xe1   : > { %v387_v3 = vadd.f32 %v958_v31, %v386_v2 }
  0xe3   : > { %v411_v6 = vmax.f32 %v387_v3, 0.0 }
  0xe8   : > { %v388_v4 = vpop.f32.mrf.mxu0 }
  0xe9   : > { %v389_v5 = vadd.f32 %v958_v31, %v388_v4 }
  0xeb   : > { %v412_v7 = vmax.f32 %v389_v5, 0.0 }
  0xed   : > { %v422_v8 = vpack.c.bf16 %v412_v7, %v411_v6 }
  0xef   : > { %787 = vmatmul.msk.bf16.gmra.mxu1 %vm461_vm1, %v422_v8 }
  0xf0   : > { %v391_v9 = vpop.f32.mrf.mxu0 }
  0xf1   : > { %v392_v10 = vadd.f32 %v958_v31, %v391_v9 }
  0xf3   : > { %v413_v15 = vmax.f32 %v392_v10, 0.0 }
  0xf8   : > { %v393_v11 = vpop.f32.mrf.mxu0 }
  0xf9   : > { %v394_v13 = vadd.f32 %v958_v31, %v393_v11 }
  0xfb   : > { %v414_v16 = vmax.f32 %v394_v13, 0.0 }
  0xfd   : > { %v423_v17 = vpack.c.bf16 %v414_v16, %v413_v15 }
  0xff   : > { %788 = vmatmul.msk.bf16.vlgmr.msrb.gmra.mxu3 %vm461_vm1, %v423_v17 }
 0x10f   : > { %789 = vmatmul.msk.bf16.gmra.mxu3 %vm461_vm1, %v424_v26 }
 0x11c   : > { %v495_v27 = vpop.f32.mrf.mxu1 }
 0x11d   : > { %v496_v29 = vadd.f32 %v845_v28, %v495_v27 }
 0x11f   : > { %v535_v31 = vmax.f32 %v496_v29, 0.0 }
 0x124   : > { %v497_v30 = vpop.f32.mrf.mxu1 }
 0x125   : > { %v498_v32 = vadd.f32 %v845_v28, %v497_v30 }
 0x127   : > { %v536_v33 = vmax.f32 %v498_v32, 0.0 }
 0x129   : > { %v551_v34 = vpack.c.bf16 %v536_v33, %v535_v31 }
 0x12b   : > { %806 = vmatmul.msk.bf16.vlgmr.msra.gmra.mxu2 %vm461_vm1, %v551_v34 }
 0x12c   : > { %v500_v35 = vpop.f32.mrf.mxu1 }
 0x12d   : > { %v501_v36 = vadd.f32 %v845_v28, %v500_v35 }
 0x12f   : > { %v537_v39 = vmax.f32 %v501_v36, 0.0 }
 0x134   : > { %v502_v37 = vpop.f32.mrf.mxu1 }
 0x135   : > { %v503_v38 = vadd.f32 %v845_v28, %v502_v37 }
 0x137   : > { %v538_v40 = vmax.f32 %v503_v38, 0.0 }
 0x139   : > { %v552_v41 = vpack.c.bf16 %v538_v40, %v537_v39 }
 0x13b   : > { %807 = vmatmul.msk.bf16.gmra.mxu2 %vm461_vm1, %v552_v41 }
 0x13c   : > { %v505_v42 = vpop.f32.mrf.mxu1 }
 0x13d   : > { %v506_v43 = vadd.f32 %v845_v28, %v505_v42 }
 0x13f   : > { %v539_v46 = vmax.f32 %v506_v43, 0.0 }
 0x144   : > { %v507_v44 = vpop.f32.mrf.mxu1 }
 0x145   : > { %v508_v45 = vadd.f32 %v845_v28, %v507_v44 }
 0x147   : > { %v540_v47 = vmax.f32 %v508_v45, 0.0 }
 0x149   : > { %v553_v48 = vpack.c.bf16 %v540_v47, %v539_v46 }
 0x14b   : > { %808 = vmatmul.msk.bf16.gmra.mxu2 %vm461_vm1, %v553_v48 }
 0x14c   : > { %v510_v49 = vpop.f32.mrf.mxu1 }
 0x14d   : > { %v511_v50 = vadd.f32 %v845_v28, %v510_v49 }
 0x14f   : > { %v541_v53 = vmax.f32 %v511_v50, 0.0 }
 0x154   : > { %v512_v51 = vpop.f32.mrf.mxu1 }
 0x155   : > { %v513_v52 = vadd.f32 %v845_v28, %v512_v51 }
 0x157   : > { %v542_v54 = vmax.f32 %v513_v52, 0.0 }
 0x159   : > { %v554_v55 = vpack.c.bf16 %v542_v54, %v541_v53 }
 0x15b   : > { %809 = vmatmul.msk.bf16.gmra.mxu2 %vm461_vm1, %v554_v55 }
 0x15c   : > { %v515_v56 = vpop.f32.mrf.mxu1 }
 0x15d   : > { %v516_v57 = vadd.f32 %v845_v28, %v515_v56 }
 0x15f   : > { %v543_v60 = vmax.f32 %v516_v57, 0.0 }
 0x164   : > { %v517_v58 = vpop.f32.mrf.mxu1 }
 0x165   : > { %v518_v59 = vadd.f32 %v845_v28, %v517_v58 }
 0x167   : > { %v544_v61 = vmax.f32 %v518_v59, 0.0 }
 0x169   : > { %v555_v62 = vpack.c.bf16 %v544_v61, %v543_v60 }
 0x16b   : > { %810 = vmatmul.msk.bf16.gmra.mxu2 %vm461_vm1, %v555_v62 }
 0x16c   : > { %v520_v63 = vpop.f32.mrf.mxu1 }
 0x16d   : > { %v521_v0 = vadd.f32 %v845_v28, %v520_v63 }
 0x16f   : > { %v545_v3 = vmax.f32 %v521_v0, 0.0 }
 0x174   : > { %v522_v1 = vpop.f32.mrf.mxu1 }
 0x175   : > { %v523_v2 = vadd.f32 %v845_v28, %v522_v1 }
 0x177   : > { %v546_v4 = vmax.f32 %v523_v2, 0.0 }
 0x179   : > { %v556_v5 = vpack.c.bf16 %v546_v4, %v545_v3 }
 0x17b   : > { %811 = vmatmul.msk.bf16.gmra.mxu2 %vm461_vm1, %v556_v5 }
 0x182   : > { %v525_v6 = vpop.f32.mrf.mxu3 }
 0x183   : > { %v526_v7 = vadd.f32 %v845_v28, %v525_v6 }
 0x185   : > { %v547_v10 = vmax.f32 %v526_v7, 0.0 }
 0x18a   : > { %v527_v8 = vpop.f32.mrf.mxu3 }
 0x18b   : > { %v528_v9 = vadd.f32 %v845_v28, %v527_v8 }
 0x18d   : > { %v548_v11 = vmax.f32 %v528_v9, 0.0 }
 0x18f   : > { %v557_v12 = vpack.c.bf16 %v548_v11, %v547_v10 }
 0x191   : > { %812 = vmatmul.msk.bf16.vlgmr.msra.gmra.mxu3 %vm461_vm1, %v557_v12 }
 0x192   : > { %v530_v13 = vpop.f32.mrf.mxu3 }
 0x193   : > { %v531_v14 = vadd.f32 %v845_v28, %v530_v13 }
 0x195   : > { %v549_v17 = vmax.f32 %v531_v14, 0.0 }
 0x19a   : > { %v532_v15 = vpop.f32.mrf.mxu3 }
 0x19b   : > { %v533_v16 = vadd.f32 %v845_v28, %v532_v15 }
 0x19d   : > { %v550_v18 = vmax.f32 %v533_v16, 0.0 }
 0x19f   : > { %v558_v19 = vpack.c.bf16 %v550_v18, %v549_v17 }
 0x1a1   : > { %813 = vmatmul.msk.bf16.gmra.mxu3 %vm461_vm1, %v558_v19 }
 0x1ae   : > { %v628_v21 = vpop.f32.mrf.mxu2 }
 0x1af   : > { %v629_v22 = vadd.f32 %v846_v20, %v628_v21 }
 0x1b1   : > { %669 = vst.msk [vmem:[%s1015_s16] sm:$0xff] %vm668_vm2, %v629_v22 }
 0x1b6   : > { %v630_v23 = vpop.f32.mrf.mxu2 }
 0x1b7   : > { %v631_v24 = vadd.f32 %v846_v20, %v630_v23 }
 0x1b9   : > { %670 = vst.msk [vmem:[%s1015_s16 + $0x8] sm:$0xff] %vm668_vm2, %v631_v24 }
 0x1be   : > { %v633_v25 = vpop.f32.mrf.mxu2 }
 0x1bf   : > { %v634_v26 = vadd.f32 %v846_v20, %v633_v25 }
 0x1c1   : > { %671 = vst.msk [vmem:[%s1015_s16 + $0x10] sm:$0xff] %vm668_vm2, %v634_v26 }
 0x1c6   : > { %v635_v27 = vpop.f32.mrf.mxu2 }
 0x1c7   : > { %v636_v28 = vadd.f32 %v846_v20, %v635_v27 }
 0x1c9   : > { %672 = vst.msk [vmem:[%s1015_s16 + $0x18] sm:$0xff] %vm668_vm2, %v636_v28 }
 0x1ce   : > { %v638_v29 = vpop.f32.mrf.mxu2 }
 0x1cf   : > { %v639_v30 = vadd.f32 %v846_v20, %v638_v29 }
 0x1d1   : > { %673 = vst.msk [vmem:[%s1015_s16 + $0x20] sm:$0xff] %vm668_vm2, %v639_v30 }
 0x1d6   : > { %v640_v32 = vpop.f32.mrf.mxu2 }
 0x1d7   : > { %v641_v31 = vadd.f32 %v846_v20, %v640_v32 }
 0x1d9   : > { %674 = vst.msk [vmem:[%s1015_s16 + $0x28] sm:$0xff] %vm668_vm2, %v641_v31 }
 0x1de   : > { %v643_v33 = vpop.f32.mrf.mxu2 }
 0x1df   : > { %v644_v34 = vadd.f32 %v846_v20, %v643_v33 }
 0x1e1   : > { %675 = vst.msk [vmem:[%s1015_s16 + $0x30] sm:$0xff] %vm668_vm2, %v644_v34 }
 0x1e6   : > { %v645_v35 = vpop.f32.mrf.mxu2 }
 0x1e7   : > { %v646_v36 = vadd.f32 %v846_v20, %v645_v35 }
 0x1e9   : > { %676 = vst.msk [vmem:[%s1015_s16 + $0x38] sm:$0xff] %vm668_vm2, %v646_v36 }
 0x1ee   : > { %v648_v37 = vpop.f32.mrf.mxu2 }
 0x1ef   : > { %v649_v38 = vadd.f32 %v846_v20, %v648_v37 }
 0x1f1   : > { %677 = vst.msk [vmem:[%s1015_s16 + $0x40] sm:$0xff] %vm668_vm2, %v649_v38 }
 0x1f6   : > { %v650_v39 = vpop.f32.mrf.mxu2 }
 0x1f7   : > { %v651_v40 = vadd.f32 %v846_v20, %v650_v39 }
 0x1f9   : > { %678 = vst.msk [vmem:[%s1015_s16 + $0x48] sm:$0xff] %vm668_vm2, %v651_v40 }
 0x1fe   : > { %v653_v41 = vpop.f32.mrf.mxu2 }
 0x1ff   : > { %v654_v42 = vadd.f32 %v846_v20, %v653_v41 }
 0x201   : > { %679 = vst.msk [vmem:[%s1015_s16 + $0x50] sm:$0xff] %vm668_vm2, %v654_v42 }
 0x206   : > { %v655_v43 = vpop.f32.mrf.mxu2 }
 0x207   : > { %v656_v44 = vadd.f32 %v846_v20, %v655_v43 }
 0x209   : > { %680 = vst.msk [vmem:[%s1015_s16 + $0x58] sm:$0xff] %vm668_vm2, %v656_v44 }
 0x214   : > { %v658_v45 = vpop.f32.mrf.mxu3 }
 0x215   : > { %v659_v46 = vadd.f32 %v846_v20, %v658_v45 }
 0x217   : > { %681 = vst.msk [vmem:[%s1015_s16 + $0x60] sm:$0xff] %vm668_vm2, %v659_v46 }
 0x21c   : > { %v660_v47 = vpop.f32.mrf.mxu3 }
 0x21d   : > { %v661_v48 = vadd.f32 %v846_v20, %v660_v47 }
 0x21f   : > { %682 = vst.msk [vmem:[%s1015_s16 + $0x68] sm:$0xff] %vm668_vm2, %v661_v48 }
 0x224   : > { %v663_v49 = vpop.f32.mrf.mxu3 }
 0x225   : > { %v664_v50 = vadd.f32 %v846_v20, %v663_v49 }
 0x227   : > { %683 = vst.msk [vmem:[%s1015_s16 + $0x70] sm:$0xff] %vm668_vm2, %v664_v50 }
 0x22c   : > { %v665_v51 = vpop.f32.mrf.mxu3 }
 0x22d   : > { %v666_v52 = vadd.f32 %v846_v20, %v665_v51 }
 0x22f   : > { %684 = vst.msk [vmem:[%s1015_s16 + $0x78] sm:$0xff] %vm668_vm2, %v666_v52 }
 0x230 PF: > { %s17_s24 = sadd.s32 1, %s853_s24  }
 0x231   : > { %p14_p4 = scmp.ge.s32.totalorder %s17_s24, 4  }
 0x233   :  { %16 = sbr.rel (!%p14_p4) target bundleno = 1 (0x1), region = 78 }

</bundles_post_ra>
